<compile_context>
chip_gen: v7x
topology: tpu7x:2x2x1
jax: 0.10.0
libtpu: 0.0.40
codegen_flags: <defaults>
</compile_context>

<pallas_src>
import math
import numpy as np

import jax
import jax.numpy as jnp
from jax.experimental import pallas as pl

# ----------------------------- config ------------------------------------
B, S, H = 2, 8, 32             # batch, seq, hidden
NUM_HEADS = 4
NUM_KV_HEADS = 2
HEAD_DIM = H // NUM_HEADS      # 8
GROUPS = NUM_HEADS // NUM_KV_HEADS
HQ = NUM_HEADS * HEAD_DIM      # 32
HK = NUM_KV_HEADS * HEAD_DIM   # 16
HALF = HEAD_DIM // 2           # 4
ROPE_BASE = 10000.0
LORA_R = 16
LORA_ALPHA = 16
LORA_SCALING = LORA_ALPHA / LORA_R   # = 1.0


# ----------------------------- fused kernel --------------------------------
def fused_attention_kernel(x_ref, wqkv_ref, wo_ref, cos_ref, sin_l_ref,
                           sin_r_ref, mask_ref, o_ref):
    """Whole forward in VMEM: fused QKV proj -> RoPE -> one block-masked
    attention (all batches & heads in a single score/PV matmul) -> o_proj.

    x_ref     (B*S, H)        hidden states, batch folded into rows
    wqkv_ref  (H, HQ+2*HK)    [q * 1/sqrt(D) | k | v] merged-LoRA weights
    wo_ref    (HQ, H)         o_proj weight
    cos_ref   (B*S, HQ)       pre-tiled RoPE cos table
    sin_l_ref (B*S, HQ)       -sin, zeroed on each head's second half
    sin_r_ref (B*S, HQ)       +sin, zeroed on each head's first half
    mask_ref  (NUM_HEADS*B*S, NUM_KV_HEADS*B*S)  additive block mask
    o_ref     (B*S, H)        attention output (single lane-dense store)
    """
    x = x_ref[...]

    # One fused q/k/v projection on the MXU (LoRA delta merged, q pre-scaled).
    qkv = jnp.dot(x, wqkv_ref[...], preferred_element_type=jnp.float32)
    q = qkv[:, :HQ]                       # (BS, HQ)  natural head-major layout
    k = qkv[:, HQ:HQ + HK]                # (BS, HK)
    v = qkv[:, HQ + HK:]                  # (BS, HK)

    # RoPE, fully elementwise on the VPU: rotate_half is two static rolls
    # (slice+concat) whose wrap-around lanes are zeroed by the host-masked
    # sin tables; the k tables are just the first HK columns of the q tables.
    cos_q = cos_ref[...]
    sin_l = sin_l_ref[...]
    sin_r = sin_r_ref[...]
    qr = (q * cos_q
          + jnp.roll(q, -HALF, axis=1) * sin_l
          + jnp.roll(q, HALF, axis=1) * sin_r)
    kr = (k * cos_q[:, :HK]
          + jnp.roll(k, -HALF, axis=1) * sin_l[:, :HK]
          + jnp.roll(k, HALF, axis=1) * sin_r[:, :HK])

    # Stack heads onto rows (head-major): rows are (head, batch, seq) for Q
    # and (kv_head, batch, seq) for K/V.  Aligned 8-lane slices + one concat.
    q_big = jnp.concatenate(
        [qr[:, h * HEAD_DIM:(h + 1) * HEAD_DIM] for h in range(NUM_HEADS)],
        axis=0)                                                   # (NH*BS, D)
    k_big = jnp.concatenate(
        [kr[:, g * HEAD_DIM:(g + 1) * HEAD_DIM] for g in range(NUM_KV_HEADS)],
        axis=0)                                                   # (NKV*BS, D)
    v_big = jnp.concatenate(
        [v[:, g * HEAD_DIM:(g + 1) * HEAD_DIM] for g in range(NUM_KV_HEADS)],
        axis=0)                                                   # (NKV*BS, D)

    # ONE score matmul for every (batch, head) pair; the additive mask carries
    # the causal, cross-batch and GQA-group structure.
    scores = jax.lax.dot_general(q_big, k_big, (((1,), (1,)), ((), ())),
                                 preferred_element_type=jnp.float32)  # (64,32)
    scores = scores + mask_ref[...]

    # Exact f32 softmax (matches torch softmax(dim=-1, dtype=float32)).
    scores = scores - jnp.max(scores, axis=-1, keepdims=True)
    p = jnp.exp(scores)
    p = p * pl.reciprocal(jnp.sum(p, axis=-1, keepdims=True), approx=False)

    # ONE PV matmul for every (batch, head) pair; masked columns contribute 0.
    ctx = jnp.dot(p, v_big, preferred_element_type=jnp.float32)   # (NH*BS, D)

    # Regroup heads back onto lanes -> (B*S, HQ), single o_proj matmul, single
    # store.  No VMEM scratch, no store->load fence.
    ctx_flat = jnp.concatenate(
        [ctx[h * (B * S):(h + 1) * (B * S), :] for h in range(NUM_HEADS)],
        axis=1)                                                    # (BS, HQ)
    o_ref[...] = jnp.dot(ctx_flat, wo_ref[...],
                         preferred_element_type=jnp.float32)


# ----------------------------- wrapper --------------------------------------
def llama_attention_forward(hidden_states, attention_mask, params, rope_tables):
    """Forward pass (attn_output only; output_attentions / use_cache off)."""
    wqkv, wo = params
    cos_t, sin_l, sin_r = rope_tables

    x2 = hidden_states.reshape(B * S, H)          # free contiguous reshape

    # Bake causal mask + batch separation + GQA head->kv-group mapping into a
    # single additive block mask.
    #   rows:    (head, batch, q_pos)   cols: (kv_head, batch, k_pos)
    am = attention_mask.reshape(B, S, S)
    h_ids = jnp.arange(NUM_HEADS)[:, None, None, None, None, None]
    g_ids = jnp.arange(NUM_KV_HEADS)[None, None, None, :, None, None]
    b_ids = jnp.arange(B)[None, :, None, None, None, None]
    b2_ids = jnp.arange(B)[None, None, None, None, :, None]
    valid = ((h_ids // GROUPS) == g_ids) & (b_ids == b2_ids)
    vals = am[None, :, :, None, None, :]
    mask_big = jnp.where(valid, vals, jnp.float32(-1e9)).reshape(
        NUM_HEADS * B * S, NUM_KV_HEADS * B * S)

    out = pl.pallas_call(
        fused_attention_kernel,
        out_shape=jax.ShapeDtypeStruct((B * S, H), jnp.float32),
    )(x2, wqkv, wo, cos_t, sin_l, sin_r, mask_big)

    return out.reshape(B, S, H)


# ----------------------------- parameter setup -----------------------------
def merged_lora_weight(key, out_dim, in_dim):
    """lora.Linear with merged update: W_eff = W + scaling * (B @ A), returned
    transposed to (in, out) so kernels compute y = x @ w."""
    k1, k2, k3 = jax.random.split(key, 3)
    w = jax.random.normal(k1, (out_dim, in_dim), jnp.float32) * 0.05
    a = jax.random.normal(k2, (LORA_R, in_dim), jnp.float32) * 0.02
    b = jax.random.normal(k3, (out_dim, LORA_R), jnp.float32) * 0.02
    w_eff = w + LORA_SCALING * (b @ a)
    return jnp.asarray(w_eff.T)                                  # (in, out)


def make_rope_tables(seq_len, d):
    """Pre-tiled RoPE tables: cos, -sin masked to the first half of each head,
    +sin masked to the second half (so in-kernel RoPE is rolls + FMAs)."""
    inv_freq = 1.0 / (ROPE_BASE ** (np.arange(0, d, 2, dtype=np.float32) / d))
    t = np.arange(seq_len, dtype=np.float32)
    freqs = np.outer(t, inv_freq)                        # (S, d/2)
    emb = np.concatenate([freqs, freqs], axis=-1)        # (S, d)
    cos = np.cos(emb).astype(np.float32)
    sin = np.sin(emb).astype(np.float32)
    first_half = np.arange(d) < (d // 2)
    sin_l = np.where(first_half, -sin, 0.0).astype(np.float32)
    sin_r = np.where(first_half, 0.0, sin).astype(np.float32)

    def tile_q(tab):                                     # (S, d) -> (B*S, HQ)
        return jnp.asarray(np.tile(np.tile(tab, (1, NUM_HEADS)), (B, 1)))

    return (tile_q(cos), tile_q(sin_l), tile_q(sin_r),
            jnp.asarray(cos), jnp.asarray(sin))


# ----------------------------- reference -----------------------------------
def reference(x, mask, wq, wk, wv, wo, cos, sin):
    """Pure-JAX mirror of the PyTorch forward (natural-layout weights)."""
    q = x @ wq
    k = x @ wk
    v = x @ wv
    q = q.reshape(B, S, NUM_HEADS, HEAD_DIM).transpose(0, 2, 1, 3)
    k = k.reshape(B, S, NUM_KV_HEADS, HEAD_DIM).transpose(0, 2, 1, 3)
    v = v.reshape(B, S, NUM_KV_HEADS, HEAD_DIM).transpose(0, 2, 1, 3)

    def rot_half(u):
        return jnp.concatenate([-u[..., HEAD_DIM // 2:], u[..., :HEAD_DIM // 2]], -1)

    q = q * cos[None, None] + rot_half(q) * sin[None, None]
    k = k * cos[None, None] + rot_half(k) * sin[None, None]
    k = jnp.repeat(k, GROUPS, axis=1)                            # repeat_kv
    v = jnp.repeat(v, GROUPS, axis=1)
    s = jnp.einsum('bhqd,bhkd->bhqk', q, k) / math.sqrt(HEAD_DIM) + mask
    p = jax.nn.softmax(s.astype(jnp.float32), axis=-1)
    o = jnp.einsum('bhqk,bhkd->bhqd', p, v)
    o = o.transpose(0, 2, 1, 3).reshape(B, S, H)
    return o @ wo


# ----------------------------- main -----------------------------------------
if __name__ == "__main__":
    key = jax.random.PRNGKey(0)
    kx, kq, kk, kv, ko = jax.random.split(key, 5)

    hidden_states = jax.random.normal(kx, (B, S, H), jnp.float32)

    # natural-layout merged-LoRA weights (in, out)
    wq_n = merged_lora_weight(kq, HQ, H)
    wk_n = merged_lora_weight(kk, HK, H)
    wv_n = merged_lora_weight(kv, HK, H)
    wo_n = merged_lora_weight(ko, H, HQ)

    # One-time host-side weight transforms: fold 1/sqrt(head_dim) into the q
    # columns and fuse q/k/v into a single projection matrix.
    wqkv = jnp.concatenate(
        [wq_n * jnp.float32(1.0 / math.sqrt(HEAD_DIM)), wk_n, wv_n], axis=1)

    cos_t, sin_l, sin_r, cos_full, sin_full = make_rope_tables(S, HEAD_DIM)

    # causal additive mask in the module's (B, 1, S, S) format
    neg = jnp.float32(-1e9)
    causal = jnp.where(jnp.tril(jnp.ones((S, S), jnp.bool_)),
                       jnp.float32(0.0), neg).astype(jnp.float32)
    attention_mask = jnp.broadcast_to(causal[None, None], (B, 1, S, S))

    out = llama_attention_forward(hidden_states, attention_mask,
                                  (wqkv, wo_n), (cos_t, sin_l, sin_r))
    out = jax.block_until_ready(out)

    ref = reference(hidden_states, attention_mask, wq_n, wk_n, wv_n, wo_n,
                    cos_full, sin_full)
    assert out.shape == (B, S, H)
    max_err = float(jnp.max(jnp.abs(out - ref)))
    assert jnp.allclose(out, ref, atol=2e-3, rtol=2e-3), max_err

    print("KERNEL_OK")
</pallas_src>

<mosaic_0001>
module attributes {stable_mosaic.version = 11 : i64} {
  func.func @fused_attention_kernel(%arg0: memref<16x32xf32, #tpu.memory_space<vmem>>, %arg1: memref<32x64xf32, #tpu.memory_space<vmem>>, %arg2: memref<32x32xf32, #tpu.memory_space<vmem>>, %arg3: memref<16x32xf32, #tpu.memory_space<vmem>>, %arg4: memref<16x32xf32, #tpu.memory_space<vmem>>, %arg5: memref<16x32xf32, #tpu.memory_space<vmem>>, %arg6: memref<64x32xf32, #tpu.memory_space<vmem>>, %arg7: memref<16x32xf32, #tpu.memory_space<vmem>>) attributes {dimension_semantics = [], scalar_prefetch = 0 : i64, scratch_operands = 0 : i64, tpu.core_type = #tpu.core_type<tc>} {
    %c0 = arith.constant 0 : index
    %c0_0 = arith.constant 0 : index
    %0 = vector.load %arg0[%c0, %c0_0] : memref<16x32xf32, #tpu.memory_space<vmem>>, vector<16x32xf32>
    %c0_1 = arith.constant 0 : index
    %c0_2 = arith.constant 0 : index
    %1 = vector.load %arg1[%c0_1, %c0_2] : memref<32x64xf32, #tpu.memory_space<vmem>>, vector<32x64xf32>
    %cst = arith.constant dense<0.000000e+00> : vector<16x64xf32>
    %2 = tpu.matmul %0, %1, %cst {dimension_numbers = #tpu.dot_dimension_numbers<[1], [0], [0], [1], [0, 0, 1, 1], [], []>} : vector<16x32xf32>, vector<32x64xf32>, vector<16x64xf32> -> vector<16x64xf32>
    %3 = vector.extract_strided_slice %2 {offsets = [0, 0], sizes = [16, 32], strides = [1, 1]} : vector<16x64xf32> to vector<16x32xf32>
    %4 = vector.extract_strided_slice %2 {offsets = [0, 32], sizes = [16, 16], strides = [1, 1]} : vector<16x64xf32> to vector<16x16xf32>
    %5 = vector.extract_strided_slice %2 {offsets = [0, 48], sizes = [16, 16], strides = [1, 1]} : vector<16x64xf32> to vector<16x16xf32>
    %c0_3 = arith.constant 0 : index
    %c0_4 = arith.constant 0 : index
    %6 = vector.load %arg3[%c0_3, %c0_4] : memref<16x32xf32, #tpu.memory_space<vmem>>, vector<16x32xf32>
    %c0_5 = arith.constant 0 : index
    %c0_6 = arith.constant 0 : index
    %7 = vector.load %arg4[%c0_5, %c0_6] : memref<16x32xf32, #tpu.memory_space<vmem>>, vector<16x32xf32>
    %c0_7 = arith.constant 0 : index
    %c0_8 = arith.constant 0 : index
    %8 = vector.load %arg5[%c0_7, %c0_8] : memref<16x32xf32, #tpu.memory_space<vmem>>, vector<16x32xf32>
    %9 = arith.mulf %3, %6 : vector<16x32xf32>
    %10 = vector.extract_strided_slice %3 {offsets = [0, 4], sizes = [16, 28], strides = [1, 1]} : vector<16x32xf32> to vector<16x28xf32>
    %11 = vector.extract_strided_slice %3 {offsets = [0, 0], sizes = [16, 4], strides = [1, 1]} : vector<16x32xf32> to vector<16x4xf32>
    %12 = tpu.concatenate %10, %11 in 1 : vector<16x28xf32>, vector<16x4xf32> -> vector<16x32xf32>
    %13 = arith.mulf %12, %7 : vector<16x32xf32>
    %14 = arith.addf %9, %13 : vector<16x32xf32>
    %15 = vector.extract_strided_slice %3 {offsets = [0, 28], sizes = [16, 4], strides = [1, 1]} : vector<16x32xf32> to vector<16x4xf32>
    %16 = vector.extract_strided_slice %3 {offsets = [0, 0], sizes = [16, 28], strides = [1, 1]} : vector<16x32xf32> to vector<16x28xf32>
    %17 = tpu.concatenate %15, %16 in 1 : vector<16x4xf32>, vector<16x28xf32> -> vector<16x32xf32>
    %18 = arith.mulf %17, %8 : vector<16x32xf32>
    %19 = arith.addf %14, %18 : vector<16x32xf32>
    %20 = vector.extract_strided_slice %6 {offsets = [0, 0], sizes = [16, 16], strides = [1, 1]} : vector<16x32xf32> to vector<16x16xf32>
    %21 = arith.mulf %4, %20 : vector<16x16xf32>
    %22 = vector.extract_strided_slice %4 {offsets = [0, 4], sizes = [16, 12], strides = [1, 1]} : vector<16x16xf32> to vector<16x12xf32>
    %23 = vector.extract_strided_slice %4 {offsets = [0, 0], sizes = [16, 4], strides = [1, 1]} : vector<16x16xf32> to vector<16x4xf32>
    %24 = tpu.concatenate %22, %23 in 1 : vector<16x12xf32>, vector<16x4xf32> -> vector<16x16xf32>
    %25 = vector.extract_strided_slice %7 {offsets = [0, 0], sizes = [16, 16], strides = [1, 1]} : vector<16x32xf32> to vector<16x16xf32>
    %26 = arith.mulf %24, %25 : vector<16x16xf32>
    %27 = arith.addf %21, %26 : vector<16x16xf32>
    %28 = vector.extract_strided_slice %4 {offsets = [0, 12], sizes = [16, 4], strides = [1, 1]} : vector<16x16xf32> to vector<16x4xf32>
    %29 = vector.extract_strided_slice %4 {offsets = [0, 0], sizes = [16, 12], strides = [1, 1]} : vector<16x16xf32> to vector<16x12xf32>
    %30 = tpu.concatenate %28, %29 in 1 : vector<16x4xf32>, vector<16x12xf32> -> vector<16x16xf32>
    %31 = vector.extract_strided_slice %8 {offsets = [0, 0], sizes = [16, 16], strides = [1, 1]} : vector<16x32xf32> to vector<16x16xf32>
    %32 = arith.mulf %30, %31 : vector<16x16xf32>
    %33 = arith.addf %27, %32 : vector<16x16xf32>
    %34 = vector.extract_strided_slice %19 {offsets = [0, 0], sizes = [16, 8], strides = [1, 1]} : vector<16x32xf32> to vector<16x8xf32>
    %35 = vector.extract_strided_slice %19 {offsets = [0, 8], sizes = [16, 8], strides = [1, 1]} : vector<16x32xf32> to vector<16x8xf32>
    %36 = vector.extract_strided_slice %19 {offsets = [0, 16], sizes = [16, 8], strides = [1, 1]} : vector<16x32xf32> to vector<16x8xf32>
    %37 = vector.extract_strided_slice %19 {offsets = [0, 24], sizes = [16, 8], strides = [1, 1]} : vector<16x32xf32> to vector<16x8xf32>
    %38 = tpu.concatenate %34, %35, %36, %37 in 0 : vector<16x8xf32>, vector<16x8xf32>, vector<16x8xf32>, vector<16x8xf32> -> vector<64x8xf32>
    %39 = vector.extract_strided_slice %33 {offsets = [0, 0], sizes = [16, 8], strides = [1, 1]} : vector<16x16xf32> to vector<16x8xf32>
    %40 = vector.extract_strided_slice %33 {offsets = [0, 8], sizes = [16, 8], strides = [1, 1]} : vector<16x16xf32> to vector<16x8xf32>
    %41 = tpu.concatenate %39, %40 in 0 : vector<16x8xf32>, vector<16x8xf32> -> vector<32x8xf32>
    %42 = vector.extract_strided_slice %5 {offsets = [0, 0], sizes = [16, 8], strides = [1, 1]} : vector<16x16xf32> to vector<16x8xf32>
    %43 = vector.extract_strided_slice %5 {offsets = [0, 8], sizes = [16, 8], strides = [1, 1]} : vector<16x16xf32> to vector<16x8xf32>
    %44 = tpu.concatenate %42, %43 in 0 : vector<16x8xf32>, vector<16x8xf32> -> vector<32x8xf32>
    %cst_9 = arith.constant dense<0.000000e+00> : vector<64x32xf32>
    %45 = tpu.matmul %38, %41, %cst_9 {dimension_numbers = #tpu.dot_dimension_numbers<[1], [1], [0], [0], [0, 0, 1, 0], [], []>} : vector<64x8xf32>, vector<32x8xf32>, vector<64x32xf32> -> vector<64x32xf32>
    %c0_10 = arith.constant 0 : index
    %c0_11 = arith.constant 0 : index
    %46 = vector.load %arg6[%c0_10, %c0_11] : memref<64x32xf32, #tpu.memory_space<vmem>>, vector<64x32xf32>
    %47 = arith.addf %45, %46 : vector<64x32xf32>
    %cst_12 = arith.constant dense<0xFF800000> : vector<64xf32>
    %48 = vector.multi_reduction <maximumf>, %47, %cst_12 [1] : vector<64x32xf32> to vector<64xf32>
    %49 = vector.shape_cast %48 : vector<64xf32> to vector<64x1xf32>
    %50 = vector.broadcast %49 : vector<64x1xf32> to vector<64x32xf32>
    %51 = arith.subf %47, %50 : vector<64x32xf32>
    %52 = math.exp %51 : vector<64x32xf32>
    %cst_13 = arith.constant dense<0.000000e+00> : vector<64xf32>
    %53 = vector.multi_reduction <add>, %52, %cst_13 [1] : vector<64x32xf32> to vector<64xf32>
    %54 = vector.shape_cast %53 : vector<64xf32> to vector<64x1xf32>
    %55 = tpu.reciprocal %54 : vector<64x1xf32> -> vector<64x1xf32>
    %56 = vector.broadcast %55 : vector<64x1xf32> to vector<64x32xf32>
    %57 = arith.mulf %52, %56 : vector<64x32xf32>
    %cst_14 = arith.constant dense<0.000000e+00> : vector<64x8xf32>
    %58 = tpu.matmul %57, %44, %cst_14 {dimension_numbers = #tpu.dot_dimension_numbers<[1], [0], [0], [1], [0, 0, 1, 1], [], []>} : vector<64x32xf32>, vector<32x8xf32>, vector<64x8xf32> -> vector<64x8xf32>
    %59 = vector.extract_strided_slice %58 {offsets = [0, 0], sizes = [16, 8], strides = [1, 1]} : vector<64x8xf32> to vector<16x8xf32>
    %60 = vector.extract_strided_slice %58 {offsets = [16, 0], sizes = [16, 8], strides = [1, 1]} : vector<64x8xf32> to vector<16x8xf32>
    %61 = vector.extract_strided_slice %58 {offsets = [32, 0], sizes = [16, 8], strides = [1, 1]} : vector<64x8xf32> to vector<16x8xf32>
    %62 = vector.extract_strided_slice %58 {offsets = [48, 0], sizes = [16, 8], strides = [1, 1]} : vector<64x8xf32> to vector<16x8xf32>
    %63 = tpu.concatenate %59, %60, %61, %62 in 1 : vector<16x8xf32>, vector<16x8xf32>, vector<16x8xf32>, vector<16x8xf32> -> vector<16x32xf32>
    %c0_15 = arith.constant 0 : index
    %c0_16 = arith.constant 0 : index
    %64 = vector.load %arg2[%c0_15, %c0_16] : memref<32x32xf32, #tpu.memory_space<vmem>>, vector<32x32xf32>
    %cst_17 = arith.constant dense<0.000000e+00> : vector<16x32xf32>
    %65 = tpu.matmul %63, %64, %cst_17 {dimension_numbers = #tpu.dot_dimension_numbers<[1], [0], [0], [1], [0, 0, 1, 1], [], []>} : vector<16x32xf32>, vector<32x32xf32>, vector<16x32xf32> -> vector<16x32xf32>
    %c0_18 = arith.constant 0 : index
    %c0_19 = arith.constant 0 : index
    %66 = vector.load %arg7[%c0_18, %c0_19] : memref<16x32xf32, #tpu.memory_space<vmem>>, vector<16x32xf32>
    tpu.vector_store %arg7[%c0_18, %c0_19], %65 {strides = array<i32>} : memref<16x32xf32, #tpu.memory_space<vmem>>, vector<16x32xf32>,
    return
  }
}

</mosaic_0001>

<bundles_post_ra>
// kernel: tpu_custom_call.1
= control target key start
LH: loop header
LB: loop body
LE: loop exit
PB: predicated region body
PF: predicated region fallthrough
CT: control target
= control target key end

     0   :  { %12 = vsyncpa [#allocation3], 0  ;;  %s1333_s0 = inlined_call_operand.vmem [shape: f32[16,32], index: 0, kind: input, shape index: {}]   ;;  %s1334_s1 = inlined_call_operand.vmem [shape: f32[32,64], index: 1, kind: input, shape index: {}]   ;;  %s1335_s2 = inlined_call_operand.vmem [shape: f32[32,32], index: 2, kind: input, shape index: {}]   ;;  %s1336_s3 = inlined_call_operand.vmem [shape: f32[16,32], index: 3, kind: input, shape index: {}]   ;;  %s1337_s4 = inlined_call_operand.hbm [shape: f32[16,32], index: 4, kind: input, shape index: {}]   ;;  %s1338_s5 = inlined_call_operand.vmem [shape: f32[16,32], index: 5, kind: input, shape index: {}]   ;;  %s1339_s6 = inlined_call_operand.vmem [shape: f32[64,32], index: 6, kind: input, shape index: {}]   ;;  %s1340_s7 = inlined_call_operand.hbm [shape: f32[16,32], index: 7, kind: output, shape index: {}]  }
   0x1   :  { %13 = vsyncpa [#allocation4], 0  ;;  %s1056_s24 = smov [#allocation2]   ;;  %s1008_s28 = scalar_lea.hbm %s1337_s4, 256 }
   0x2   :  { %s27_s25 = sshll.u32 %s1056_s24, 4  ;;  %p1009_p0 = scmp.ne.s32.totalorder %s1337_s4, %s1008_s28  ;;  %s28_s25 = int_to_ptr.vmem [resolvable:$true] %s27_s25 }
   0x3   :  { %p1012_p1 = scmp.lt.u32.totalorder %s1008_s28, %s1337_s4 }
   0x5   :  { %p1014_p2 = pnand %p1012_p1, %p1009_p0 }
   0x7   :  { %1017 = shalt.err (!%p1014_p2)
}
   0x8   :  { %s1018_s10 = scalar_lea.vmem %s28_s25, 256  ;;  %p1023_p4 = scmp.lt.s32.totalorder %s28_s25, %s28_s25 }
   0x9   :  { %p1019_p3 = scmp.ne.s32.totalorder %s28_s25, %s1018_s10  ;;  %p1024_p5 = scmp.lt.s32.totalorder %s1018_s10, %s1018_s10 }
   0xb   :  { %p1025_p6 = por %p1024_p5, %p1023_p4 }
   0xd   :  { %p1026_p7 = pnand %p1025_p6, %p1019_p3 }
   0xf   :  { %1029 = shalt.err (!%p1026_p7)
}
  0x10   :  { %s1057_s11 = smov 128   ;;  %s1058_s12 = smov 8  }
  0x11   :  { %33 = dma.hbm_to_vmem [thread:$0]  %s1337_s4, 256, %s28_s25, [#allocation3], %s1057_s11, %s1057_s11, %s1058_s12  }
  0x12   :  { %1052 = dma.done.wait [#allocation3], 256  }
  0x13   :  { %1053 = vsyncadd [#allocation3], 4294967040  ;;  %vm47_vm0 = vcmask 261120   ;;  %v43_v0 = vld [vmem:[%s1334_s1] sm:$0xff]  ;;  %v44_v1 = vld [vmem:[%s1334_s1 + $0x8] sm:$0xff]  ;;  %s1059_s29 = smov 108  }
  0x14   :  { %v45_v2 = vld [vmem:[%s1334_s1 + $0x10] sm:$0xff]  ;;  %v891_v3 = vpack.c.bf16 %v44_v1, %v43_v0  ;;  %v46_v4 = vld [vmem:[%s1334_s1 + $0x18] sm:$0xff]  ;;  %v41_v5 = vld [vmem:[%s1333_s0] sm:$0xff]  ;;  %s1060_s30 = smov 92   ;;  %s1063_s8 = smov 32   ;;  %vm199_vm1 = vcmask 97280  }
  0x15   :  { %v895_v6 = vpack.c.bf16 %v46_v4, %v45_v2  ;;  %837 = vmatprep.mubr.msk.f32.mxu0 %vm47_vm0, %v41_v5  ;;  %v42_v7 = vld [vmem:[%s1333_s0 + $0x8] sm:$0xff]  ;;  %v129_v9 = vld [vmem:[%s1336_s3] sm:$0xff]  ;;  %s1061_s0 = smov 100   ;;  %vm170_vm2 = vcmask 31744   ;;  %s1064_s15 = smov 124   ;;  %vm274_vm3 = vcmask 64512  }
  0x16   :  { %892 = vmatprep.subr.bf16.mxu0 %v891_v3  ;;  %v130_v8 = vld [vmem:[%s1336_s3 + $0x8] sm:$0xff]  ;;  %s1062_s3 = smov 84   ;;  %v131_v22 = vld [vmem:[#allocation2] sm:$0xff]  ;;  %s1065_s16 = smov 4   ;;  %vm151_vm4 = vcmask 228352   ;;  %vm1206_vm5 = vmpackc.low %vm274_vm3, %vm274_vm3  ;;  %vm662_vm6 = vcmask 195584  }
  0x17   :  { %894 = vmatpush3.bf16.msra.mxu0 %v891_v3  ;;  %v1178_v15 = vld [vmem:[#allocation2 + $0x8] sm:$0xff]  ;;  %v133_v28 = vld [vmem:[%s1338_s5] sm:$0xff]  ;;  %s1067_s17 = smov 120   ;;  %s1068_s18 = smov 28   ;;  %vm659_vm7 = vcmask 130048  }
  0x18   :  { %896 = vmatprep.subr.bf16.mxu0 %v895_v6  ;;  %v1186_v27 = vld [vmem:[%s1338_s5 + $0x8] sm:$0xff]  ;;  %s1066_s5 = smov 96   ;;  %s1069_s19 = smov 112  }
  0x19   :  { %s1070_s20 = smov 104  }
  0x1b   :  { %898 = vmatpush3.bf16.msra.mxu0 %v895_v6 }
  0x1e   :  { %838 = vmatmul.mubr.msk.f32.vlgmr.msra.gmra.mrb[0].mxu0 %vm47_vm0, %v42_v7 }
  0xf1   :  { %v1156_v10 = vpop.f32.mrb[0].mxu0 }
  0xf2   :  { %195 = vrot.lane.b32.xlu1 %v1156_v10, %s1059_s29  ;;  %189 = vrot.lane.b32.xlu0 %v1156_v10, %s1060_s30  ;;  %v1160_v11 = vpop.f32.mrb[1].mxu0  ;;  %v1163_v12 = vmul.f32 %v1156_v10, %v130_v8 }
  0xf3   :  { %v1166_v13 = vmul.f32 %v129_v9, %v1160_v11  ;;  %v1170_v14 = vpack.i.bf16 %v1156_v10, %v1160_v11 }
  0xf6   :  { %160 = vrot.lane.b32.xlu1 %v1156_v10, %s1061_s0  ;;  %187 = vrot.lane.b32.xlu0 %v1160_v11, %s1060_s30 }
  0xfa   :  { %193 = vrot.lane.b32.xlu1 %v1160_v11, %s1059_s29  ;;  %158 = vrot.lane.b32.xlu0 %v1160_v11, %s1061_s0 }
  0xfe   :  { %216 = vrot.lane.b32.xlu1 %v1156_v10, %s1062_s3  ;;  %214 = vrot.lane.b32.xlu0 %v1160_v11, %s1062_s3 }
 0x102   :  { %181 = vrot.lane.b32.xlu1 %v130_v8, %s1063_s8  ;;  %179 = vrot.lane.b32.xlu0 %v129_v9, %s1063_s8 }
 0x164   :  { %v196_v16 = vpop.permute.xlu1 %195  ;;  %v190_v17 = vpop.permute.xlu0 %189 }
 0x165   :  { %v201_v18 = vsel %vm199_vm1, %v190_v17, %v196_v16 }
 0x166   :  { %v203_v19 = vmul.f32 %v201_v18, %v1178_v15 }
 0x168   :  { %v1181_v20 = vpop.permute.xlu1 %160  ;;  %208 = vrot.lane.b32.xlu1 %v203_v19, %s1063_s8  ;;  %v188_v21 = vpop.permute.xlu0 %187  ;;  %v259_v19 = vld [vmem:[%s1339_s6 + $0x8] sm:$0xff] }
 0x16c   :  { %v194_v23 = vpop.permute.xlu1 %193  ;;  %v159_v24 = vpop.permute.xlu0 %158 }
 0x16d   :  { %v200_v25 = vsel %vm199_vm1, %v188_v21, %v194_v23 }
 0x16e   :  { %v202_v26 = vmul.f32 %v200_v25, %v131_v22  ;;  %v261_v25 = vld [vmem:[%s1339_s6 + $0x18] sm:$0xff] }
 0x170   :  { %v217_v29 = vpop.permute.xlu1 %216  ;;  %206 = vrot.lane.b32.xlu0 %v202_v26, %s1063_s8  ;;  %v215_v30 = vpop.permute.xlu0 %214 }
 0x171   :  { %v221_v31 = vsel %vm170_vm2, %v217_v29, %v1181_v20  ;;  %v220_v32 = vsel %vm170_vm2, %v215_v30, %v159_v24 }
 0x172   :  { %v223_v33 = vmul.f32 %v221_v31, %v1186_v27  ;;  %v222_v34 = vmul.f32 %v220_v32, %v133_v28 }
 0x174   :  { %228 = vrot.lane.b32.xlu1 %v223_v33, %s1063_s8  ;;  %226 = vrot.lane.b32.xlu0 %v222_v34, %s1063_s8  ;;  %v182_v35 = vpop.permute.xlu1 %181  ;;  %v180_v36 = vpop.permute.xlu0 %179  ;;  %v263_v33 = vld [vmem:[%s1339_s6 + $0x28] sm:$0xff]  ;;  %v262_v34 = vld [vmem:[%s1339_s6 + $0x20] sm:$0xff] }
 0x175   :  { %v186_v39 = vmul.f32 %v1156_v10, %v182_v35  ;;  %v185_v40 = vmul.f32 %v180_v36, %v1160_v11 }
 0x178   :  { %139 = vrot.lane.b32.xlu1 %v1160_v11, %s1064_s15 }
 0x17c   :  { %141 = vrot.lane.b32.xlu1 %v1156_v10, %s1064_s15 }
 0x180   :  { %164 = vrot.lane.b32.xlu1 %v1160_v11, %s1065_s16 }
 0x1da   :  { %v209_v37 = vpop.permute.xlu1 %208 }
 0x1db   :  { %v213_v41 = vadd.f32 %v209_v37, %v186_v39 }
 0x1e2   :  { %v207_v38 = vpop.permute.xlu0 %206 }
 0x1e3   :  { %v212_v42 = vadd.f32 %v207_v38, %v185_v40 }
 0x1e6   :  { %v229_v43 = vpop.permute.xlu1 %228  ;;  %v227_v44 = vpop.permute.xlu0 %226 }
 0x1e7   :  { %v233_v45 = vadd.f32 %v229_v43, %v213_v41  ;;  %v232_v46 = vadd.f32 %v227_v44, %v212_v42  ;;  %v265_v41 = vld [vmem:[%s1339_s6 + $0x38] sm:$0xff]  ;;  %v264_v42 = vld [vmem:[%s1339_s6 + $0x30] sm:$0xff] }
 0x1e9   :  { %v951_v47 = vpack.i.bf16 %v233_v45, %v232_v46 }
 0x1ea   :  { %v140_v48 = vpop.permute.xlu1 %139 }
 0x1eb   :  { %952 = vrot.lane.b32.xlu1 %v951_v47, %s1066_s5  ;;  %947 = vrot.lane.b32.xlu0 %v951_v47, %s1067_s17 }
 0x1ee   :  { %v142_v49 = vpop.permute.xlu1 %141 }
 0x1ef   :  { %145 = vrot.lane.b32.xlu0 %v1160_v11, %s1068_s18 }
 0x1f2   :  { %v165_v50 = vpop.permute.xlu1 %164 }
 0x1f3   :  { %147 = vrot.lane.b32.xlu0 %v1156_v10, %s1068_s18  ;;  %v171_v58 = vsel %vm170_vm2, %v159_v24, %v165_v50 }
 0x1f4   :  { %v173_v61 = vmul.f32 %v171_v58, %v133_v28 }
 0x1f7   :  { %166 = vrot.lane.b32.xlu0 %v1156_v10, %s1065_s16 }
 0x25d   :  { %v953_v51 = vpop.permute.xlu1 %952  ;;  %v948_v52 = vpop.permute.xlu0 %947 }
 0x25e   :  { %v955_v53 = vunpack.i.h.bf16 %v953_v51  ;;  %v954_v54 = vunpack.i.l.bf16 %v953_v51  ;;  %957 = vrot.lane.b32.xlu0 %v948_v52, %s1066_s5 }
 0x260   :  { %v899_v56 = vpack.c.bf16 %v955_v53, %v954_v54 }
 0x261   :  { %v146_v57 = vpop.permute.xlu0 %145 }
 0x262   :  { %v152_v59 = vsel %vm151_vm4, %v140_v48, %v146_v57  ;;  %901 = vmatprep.subr.msk.bf16.mxu1 %vm1206_vm5, %v899_v56 }
 0x263   :  { %v154_v60 = vmul.f32 %v152_v59, %v131_v22  ;;  %904 = vmatpush3.bf16.xpose.msk.msra.mxu1 %vm1206_vm5, %v899_v56 }
 0x265   :  { %v156_v62 = vadd.f32 %v154_v60, %v1166_v13  ;;  %v148_v63 = vpop.permute.xlu0 %147 }
 0x266   :  { %v153_v0 = vsel %vm151_vm4, %v142_v49, %v148_v63 }
 0x267   :  { %v175_v1 = vadd.f32 %v173_v61, %v156_v62  ;;  %v155_v2 = vmul.f32 %v153_v0, %v1178_v15 }
 0x269   :  { %v167_v3 = vpop.permute.xlu0 %166  ;;  %236 = vrot.lane.b32.xlu1 %v175_v1, %s1067_s17  ;;  %848 = vmatprep.mubr.msk.f32.mxu1 %vm274_vm3, %v175_v1  ;;  %v157_v5 = vadd.f32 %v155_v2, %v1163_v12 }
 0x26a   :  { %v172_v4 = vsel %vm170_vm2, %v1181_v20, %v167_v3  ;;  %v258_v20 = vld [vmem:[%s1339_s6] sm:$0xff] }
 0x26b   :  { %v174_v6 = vmul.f32 %v172_v4, %v1186_v27  ;;  %v260_v27 = vld [vmem:[%s1339_s6 + $0x10] sm:$0xff]  ;;  %s1071_s6 = smov 80  }
 0x26d   :  { %v176_v7 = vadd.f32 %v174_v6, %v157_v5  ;;  %240 = vrot.lane.b32.xlu1 %v175_v1, %s1069_s19 }
 0x26f   :  { %238 = vrot.lane.b32.xlu0 %v176_v7, %s1067_s17 }
 0x271   :  { %244 = vrot.lane.b32.xlu1 %v175_v1, %s1070_s20 }
 0x273   :  { %242 = vrot.lane.b32.xlu0 %v176_v7, %s1069_s19  ;;  %s1072_s19 = smov 16  }
 0x277   :  { %246 = vrot.lane.b32.xlu0 %v176_v7, %s1070_s20  ;;  %s1073_s20 = smov 24  }
 0x2d0   :  { %v958_v8 = vpop.permute.xlu0 %957 }
 0x2d1   :  { %v960_v9 = vunpack.i.h.bf16 %v958_v8  ;;  %v959_v10 = vunpack.i.l.bf16 %v958_v8 }
 0x2d3   :  { %v905_v11 = vpack.c.bf16 %v960_v9, %v959_v10 }
 0x2d5   :  { %907 = vmatprep.subr.msk.bf16.mxu1 %vm1206_vm5, %v905_v11 }
 0x2d6   :  { %910 = vmatpush3.bf16.xpose.msk.msra.mxu1 %vm1206_vm5, %v905_v11 }
 0x2db   :  { %v237_v12 = vpop.permute.xlu1 %236 }
 0x2dd   :  { %849 = vmatmul.mubr.msk.f32.vlgmr.msra.gmra.mrb[0].mxu1 %vm274_vm3, %v176_v7 }
 0x2de   :  { %851 = vmatprep.mubr.msk.f32.mxu1 %vm274_vm3, %v237_v12 }
 0x2df   :  { %v241_v15 = vpop.permute.xlu1 %240 }
 0x2e1   :  { %v239_v13 = vpop.permute.xlu0 %238 }
 0x2e2   :  { %852 = vmatmul.mubr.msk.f32.gmra.mrb[2].mxu1 %vm274_vm3, %v239_v13 }
 0x2e3   :  { %854 = vmatprep.mubr.msk.f32.mxu1 %vm274_vm3, %v241_v15  ;;  %v245_v17 = vpop.permute.xlu1 %244 }
 0x2e5   :  { %v243_v16 = vpop.permute.xlu0 %242 }
 0x2e6   :  { %855 = vmatmul.mubr.msk.f32.gmra.mrb[4].mxu1 %vm274_vm3, %v243_v16 }
 0x2e7   :  { %857 = vmatprep.mubr.msk.f32.mxu1 %vm274_vm3, %v245_v17 }
 0x2e9   :  { %v247_v18 = vpop.permute.xlu0 %246 }
 0x2ea   :  { %858 = vmatmul.mubr.msk.f32.gmra.mrb[6].mxu1 %vm274_vm3, %v247_v18 }
 0x3b0   :  { %v850_v21 = vpop.f32.mrb[0].mxu1 }
 0x3b1   :  { %v371_v22 = vadd.f32 %v850_v21, %v259_v19  ;;  %v365_v23 = vpop.f32.mrb[1].mxu1 }
 0x3b2   :  { %v366_v24 = vadd.f32 %v365_v23, %v258_v20 }
 0x3b3   :  { %v407_v26 = vsel %vm47_vm0, %v371_v22, -inf }
 0x3b4   :  { %408 = vmax.xlane.f32.xlu0 %v407_v26  ;;  %v404_v29 = vsel %vm47_vm0, %v366_v24, -inf }
 0x3b5   :  { %v853_v28 = vpop.f32.mrb[2].mxu1  ;;  %405 = vmax.xlane.f32.xlu1 %v404_v29 }
 0x3b6   :  { %v381_v30 = vadd.f32 %v853_v28, %v261_v25  ;;  %v375_v31 = vpop.f32.mrb[3].mxu1 }
 0x3b7   :  { %v376_v32 = vadd.f32 %v375_v31, %v260_v27 }
 0x3b8   :  { %v413_v35 = vsel %vm47_vm0, %v381_v30, -inf }
 0x3b9   :  { %v856_v36 = vpop.f32.mrb[4].mxu1  ;;  %v410_v37 = vsel %vm47_vm0, %v376_v32, -inf  ;;  %414 = vmax.xlane.f32.xlu1 %v413_v35 }
 0x3ba   :  { %v391_v38 = vadd.f32 %v856_v36, %v263_v33  ;;  %v385_v39 = vpop.f32.mrb[5].mxu1  ;;  %411 = vmax.xlane.f32.xlu0 %v410_v37 }
 0x3bb   :  { %v386_v40 = vadd.f32 %v385_v39, %v262_v34 }
 0x3bc   :  { %v419_v43 = vsel %vm47_vm0, %v391_v38, -inf }
 0x3bd   :  { %v859_v44 = vpop.f32.mrb[6].mxu1  ;;  %v416_v45 = vsel %vm47_vm0, %v386_v40, -inf  ;;  %420 = vmax.xlane.f32.xlu1 %v419_v43 }
 0x3be   :  { %v401_v46 = vadd.f32 %v859_v44, %v265_v41  ;;  %v395_v47 = vpop.f32.mrb[7].mxu1  ;;  %417 = vmax.xlane.f32.xlu0 %v416_v45 }
 0x3bf   :  { %v396_v48 = vadd.f32 %v395_v47, %v264_v42 }
 0x3c0   :  { %v425_v49 = vsel %vm47_vm0, %v401_v46, -inf }
 0x3c1   :  { %v422_v50 = vsel %vm47_vm0, %v396_v48, -inf  ;;  %426 = vmax.xlane.f32.xlu1 %v425_v49 }
 0x3c2   :  { %423 = vmax.xlane.f32.xlu0 %v422_v50 }
 0x3d8   :  { %962 = vrot.lane.b32.xlu0 %v1170_v14, %s1067_s17 }
 0x441   :  { %v409_v51 = vpop.xlane.xlu0 %408 }
 0x442   :  { %v429_v52 = vsub.f32 %v371_v22, %v409_v51  ;;  %v406_v53 = vpop.xlane.xlu1 %405 }
 0x443   :  { %v428_v54 = vsub.f32 %v366_v24, %v406_v53 }
 0x444   :  { %v438_v55 = vmul.f32 1.442695, %v429_v52 }
 0x445   :  { %v436_v56 = vmul.f32 1.442695, %v428_v54 }
 0x446   :  { %976 = vpow2.f32 %v438_v55  ;;  %v415_v58 = vpop.xlane.xlu1 %414 }
 0x447   :  { %v412_v57 = vpop.xlane.xlu0 %411  ;;  %v431_v59 = vsub.f32 %v381_v30, %v415_v58  ;;  %978 = vpow2.f32 %v436_v56 }
 0x448   :  { %v430_v60 = vsub.f32 %v376_v32, %v412_v57 }
 0x449   :  { %v442_v61 = vmul.f32 1.442695, %v431_v59 }
 0x44a   :  { %v421_v63 = vpop.xlane.xlu1 %420  ;;  %v440_v0 = vmul.f32 1.442695, %v430_v60  ;;  %v665_v60 = vld [vmem:[%s1335_s2] sm:$0xff] }
 0x44b   :  { %v418_v62 = vpop.xlane.xlu0 %417  ;;  %980 = vpow2.f32 %v442_v61  ;;  %v433_v1 = vsub.f32 %v391_v38, %v421_v63  ;;  %v666_v61 = vld [vmem:[%s1335_s2 + $0x8] sm:$0xff] }
 0x44c   :  { %982 = vpow2.f32 %v440_v0  ;;  %v432_v5 = vsub.f32 %v386_v40, %v418_v62  ;;  %v919_v62 = vpack.c.bf16 %v666_v61, %v665_v60 }
 0x44d   :  { %v446_v6 = vmul.f32 1.442695, %v433_v1  ;;  %v667_v1 = vld [vmem:[%s1335_s2 + $0x10] sm:$0xff] }
 0x44e   :  { %v427_v8 = vpop.xlane.xlu1 %426  ;;  %v444_v11 = vmul.f32 1.442695, %v432_v5 }
 0x44f   :  { %v424_v2 = vpop.xlane.xlu0 %423  ;;  %v435_v12 = vsub.f32 %v401_v46, %v427_v8 }
 0x450   :  { %v434_v3 = vsub.f32 %v396_v48, %v424_v2  ;;  %v1269_v4 = vpop.eup %976  ;;  %v668_v2 = vld [vmem:[%s1335_s2 + $0x18] sm:$0xff]  ;;  %s1074_s2 = smov [#allocation5]  }
 0x451   :  { %v455_v9 = vsel %vm47_vm0, %v1269_v4, 0.0  ;;  %v979_v10 = vpop.eup %978  ;;  %v450_v16 = vmul.f32 1.442695, %v435_v12  ;;  %s757_s21 = sshll.u32 %s1074_s2, 4  ;;  %s758_s21 = int_to_ptr.vmem [resolvable:$true] %s757_s21 }
 0x452   :  { %v448_v7 = vmul.f32 1.442695, %v434_v3  ;;  %456 = vadd.xlane.f32.xlu1 %v455_v9  ;;  %v452_v13 = vsel %vm47_vm0, %v979_v10, 0.0  ;;  %v923_v3 = vpack.c.bf16 %v668_v2, %v667_v1  ;;  %s1030_s22 = scalar_lea.vmem %s758_s21, 256  ;;  %p1035_p9 = scmp.lt.s32.totalorder %s758_s21, %s758_s21 }
 0x453   :  { %v963_v28 = vpop.permute.xlu0 %962  ;;  %p1031_p8 = scmp.ne.s32.totalorder %s758_s21, %s1030_s22  ;;  %p1036_p10 = scmp.lt.s32.totalorder %s1030_s22, %s1030_s22 }
 0x454   :  { %984 = vpow2.f32 %v448_v7 }
 0x455   :  { %986 = vpow2.f32 %v446_v6  ;;  %v1274_v15 = vpop.eup %980  ;;  %p1037_p11 = por %p1036_p10, %p1035_p9 }
 0x456   :  { %453 = vadd.xlane.f32.xlu1 %v452_v13  ;;  %988 = vpow2.f32 %v444_v11  ;;  %v461_v17 = vsel %vm47_vm0, %v1274_v15, 0.0  ;;  %v983_v18 = vpop.eup %982 }
 0x457   :  { %990 = vpow2.f32 %v450_v16  ;;  %v458_v20 = vsel %vm47_vm0, %v983_v18, 0.0  ;;  %p1038_p12 = pnand %p1037_p11, %p1031_p8 }
 0x45a   :  { %462 = vadd.xlane.f32.xlu1 %v461_v17 }
 0x45e   :  { %v1278_v19 = vpop.eup %984  ;;  %459 = vadd.xlane.f32.xlu1 %v458_v20 }
 0x45f   :  { %v987_v21 = vpop.eup %986  ;;  %v470_v22 = vsel %vm47_vm0, %v1278_v19, 0.0 }
 0x460   :  { %471 = vadd.xlane.f32.xlu0 %v470_v22  ;;  %v467_v23 = vsel %vm47_vm0, %v987_v21, 0.0  ;;  %v989_v24 = vpop.eup %988 }
 0x461   :  { %v464_v25 = vsel %vm47_vm0, %v989_v24, 0.0  ;;  %v991_v26 = vpop.eup %990 }
 0x462   :  { %468 = vadd.xlane.f32.xlu1 %v467_v23  ;;  %v473_v27 = vsel %vm47_vm0, %v991_v26, 0.0 }
 0x466   :  { %465 = vadd.xlane.f32.xlu1 %v464_v25 }
 0x46a   :  { %474 = vadd.xlane.f32.xlu1 %v473_v27 }
 0x47b   :  { %967 = vrot.lane.b32.xlu1 %v1170_v14, %s1071_s6 }
 0x47f   :  { %972 = vrot.lane.b32.xlu1 %v963_v28, %s1071_s6 }
 0x4df   :  { %v457_v29 = vpop.xlane.xlu1 %456 }
 0x4e3   :  { %v454_v30 = vpop.xlane.xlu1 %453 }
 0x4e4   :  { %992 = vrcp.f32 %v454_v30 }
 0x4e5   :  { %994 = vrcp.f32 %v457_v29 }
 0x4e7   :  { %v463_v31 = vpop.xlane.xlu1 %462 }
 0x4eb   :  { %v460_v32 = vpop.xlane.xlu1 %459 }
 0x4ec   :  { %996 = vrcp.f32 %v460_v32 }
 0x4ed   :  { %998 = vrcp.f32 %v463_v31  ;;  %v472_v41 = vpop.xlane.xlu0 %471 }
 0x4ee   :  { %v993_v33 = vpop.eup %992 }
 0x4ef   :  { %v469_v34 = vpop.xlane.xlu1 %468  ;;  %v484_v35 = vmul.f32 %v993_v33, %v979_v10  ;;  %v995_v46 = vpop.eup %994 }
 0x4f0   :  { %v485_v48 = vmul.f32 %v995_v46, %v1269_v4 }
 0x4f1   :  { %868 = vmatprep.mubr.msk.f32.mxu0 %vm47_vm0, %v484_v35 }
 0x4f3   :  { %v466_v36 = vpop.xlane.xlu1 %465 }
 0x4f4   :  { %1000 = vrcp.f32 %v466_v36 }
 0x4f5   :  { %1002 = vrcp.f32 %v469_v34 }
 0x4f6   :  { %1004 = vrcp.f32 %v472_v41  ;;  %v997_v47 = vpop.eup %996 }
 0x4f7   :  { %v475_v37 = vpop.xlane.xlu1 %474  ;;  %v999_v49 = vpop.eup %998  ;;  %v486_v50 = vmul.f32 %v997_v47, %v983_v18 }
 0x4f8   :  { %1006 = vrcp.f32 %v475_v37  ;;  %v487_v52 = vmul.f32 %v999_v49, %v1274_v15 }
 0x4fb   :  { %v968_v38 = vpop.permute.xlu1 %967 }
 0x4fc   :  { %v970_v39 = vunpack.i.h.bf16 %v968_v38  ;;  %v969_v40 = vunpack.i.l.bf16 %v968_v38 }
 0x4fe   :  { %v911_v14 = vpack.c.bf16 %v970_v39, %v969_v40  ;;  %v1001_v51 = vpop.eup %1000 }
 0x4ff   :  { %v973_v42 = vpop.permute.xlu1 %972  ;;  %v1003_v53 = vpop.eup %1002  ;;  %v488_v54 = vmul.f32 %v1001_v51, %v989_v24 }
 0x500   :  { %v975_v43 = vunpack.i.h.bf16 %v973_v42  ;;  %v974_v44 = vunpack.i.l.bf16 %v973_v42  ;;  %912 = vmatprep.subr.bf16.mxu0 %v911_v14  ;;  %v1005_v55 = vpop.eup %1004  ;;  %v489_v56 = vmul.f32 %v1003_v53, %v987_v21 }
 0x501   :  { %914 = vmatpush3.bf16.msra.mxu0 %v911_v14  ;;  %v490_v58 = vmul.f32 %v1005_v55, %v1278_v19 }
 0x502   :  { %v915_v45 = vpack.c.bf16 %v975_v43, %v974_v44  ;;  %v1007_v57 = vpop.eup %1006 }
 0x503   :  { %v491_v59 = vmul.f32 %v1007_v57, %v991_v26 }
 0x504   :  { %916 = vmatprep.subr.bf16.mxu0 %v915_v45 }
 0x505   :  { %918 = vmatpush3.bf16.msra.mxu0 %v915_v45 }
 0x506   :  { %920 = vmatprep.subr.bf16.mxu0 %v919_v62 }
 0x508   :  { %869 = vmatmul.mubr.msk.f32.vlgmr.msra.gmra.mrb[2].mxu0 %vm47_vm0, %v485_v48 }
 0x509   :  { %871 = vmatprep.mubr.msk.f32.mxu0 %vm47_vm0, %v486_v50  ;;  %922 = vmatpush3.bf16.msra.mxu0 %v919_v62 }
 0x50a   :  { %924 = vmatprep.subr.bf16.mxu0 %v923_v3 }
 0x50c   :  { %872 = vmatmul.mubr.msk.f32.gmra.mrb[4].mxu0 %vm47_vm0, %v487_v52 }
 0x50d   :  { %874 = vmatprep.mubr.msk.f32.mxu0 %vm47_vm0, %v488_v54  ;;  %926 = vmatpush3.bf16.msra.mxu0 %v923_v3 }
 0x510   :  { %875 = vmatmul.mubr.msk.f32.gmra.mrb[6].mxu0 %vm47_vm0, %v489_v56 }
 0x511   :  { %877 = vmatprep.mubr.msk.f32.mxu0 %vm47_vm0, %v490_v58 }
 0x514   :  { %878 = vmatmul.mubr.msk.f32.gmra.mrb[8].mxu0 %vm47_vm0, %v491_v59 }
 0x5db   :  { %v870_v63 = vpop.f32.mrb[2].mxu0 }
 0x5dc   :  { %v594_v0 = vpop.f32.mrb[3].mxu0 }
 0x5df   :  { %v873_v4 = vpop.f32.mrb[4].mxu0 }
 0x5e0   :  { %637 = vrot.lane.b32.xlu0 %v873_v4, %s1058_s12  ;;  %v604_v5 = vpop.f32.mrb[5].mxu0 }
 0x5e1   :  { %635 = vrot.lane.b32.xlu1 %v604_v5, %s1058_s12 }
 0x5e3   :  { %v876_v6 = vpop.f32.mrb[6].mxu0 }
 0x5e4   :  { %v614_v7 = vpop.f32.mrb[7].mxu0 }
 0x5e5   :  { %645 = vrot.lane.b32.xlu1 %v876_v6, %s1072_s19 }
 0x5e7   :  { %v879_v8 = vpop.f32.mrb[8].mxu0 }
 0x5e8   :  { %v624_v9 = vpop.f32.mrb[9].mxu0 }
 0x5e9   :  { %643 = vrot.lane.b32.xlu1 %v614_v7, %s1072_s19 }
 0x5ed   :  { %651 = vrot.lane.b32.xlu1 %v624_v9, %s1073_s20 }
 0x5f1   :  { %653 = vrot.lane.b32.xlu1 %v879_v8, %s1073_s20 }
 0x652   :  { %v638_v15 = vpop.permute.xlu0 %637 }
 0x653   :  { %v636_v10 = vpop.permute.xlu1 %635  ;;  %v658_v19 = vsel %vm274_vm3, %v870_v63, %v638_v15 }
 0x654   :  { %v657_v13 = vsel %vm274_vm3, %v594_v0, %v636_v10 }
 0x657   :  { %v646_v11 = vpop.permute.xlu1 %645 }
 0x658   :  { %v661_v20 = vsel %vm659_vm7, %v658_v19, %v646_v11 }
 0x65b   :  { %v644_v12 = vpop.permute.xlu1 %643 }
 0x65c   :  { %v660_v16 = vsel %vm659_vm7, %v657_v13, %v644_v12 }
 0x65f   :  { %v652_v17 = vpop.permute.xlu1 %651 }
 0x660   :  { %v663_v18 = vsel %vm662_vm6, %v660_v16, %v652_v17 }
 0x661   :  { %888 = vmatprep.mubr.msk.f32.mxu0 %vm47_vm0, %v663_v18 }
 0x663   :  { %v654_v21 = vpop.permute.xlu1 %653 }
 0x664   :  { %v664_v22 = vsel %vm662_vm6, %v661_v20, %v654_v21 }
 0x665   :  { %889 = vmatmul.mubr.msk.f32.vlgmr.msra.gmra.mrb[10].mxu0 %vm47_vm0, %v664_v22 }
 0x738   :  { %v890_v23 = vpop.f32.mrb[10].mxu0 }
 0x739   :  { %751 = vst.msk [vmem:[#allocation5 + $0x8] sm:$0xff] %vm47_vm0, %v890_v23  ;;  %v741_v24 = vpop.f32.mrb[11].mxu0 }
 0x73a   :  { %750 = vst.msk [vmem:[#allocation5] sm:$0xff] %vm47_vm0, %v741_v24 }
 0x73b   :  { %1041 = shalt.err (!%p1038_p12)
}
 0x73c   :  { %s1042_s24 = scalar_lea.hbm %s1340_s7, 256 }
 0x73d   :  { %p1043_p13 = scmp.ne.s32.totalorder %s1340_s7, %s1042_s24  ;;  %p1046_p0 = scmp.lt.u32.totalorder %s1042_s24, %s1340_s7 }
 0x73f   :  { %p1048_p1 = pnand %p1046_p0, %p1043_p13 }
 0x741   :  { %1051 = shalt.err (!%p1048_p1)
}
 0x742   :  { %763 = dma.vmem_to_hbm [thread:$0]  %s758_s21, 256, %s1340_s7, [#allocation4], %s1057_s11, %s1057_s11, %s1058_s12  }
 0x743   :  { %1054 = dma.done.wait [#allocation4], 256  }
 0x744   :  { %1055 = vsyncadd [#allocation4], 4294967040 }
 0x745   :  { %767 = vsyncpa [#allocation3], 1 }
 0x746   :  { %768 = vsyncpa [#allocation4], 1 }

</bundles_post_ra>
